<compile_context>
chip_gen: v7x
topology: tpu7x:2x2x1
jax: 0.10.0
libtpu: 0.0.40
codegen_flags: <defaults>
</compile_context>

<pallas_src>
import functools
import math

import numpy as np
import jax
import jax.numpy as jnp
from jax.experimental import pallas as pl
from jax.experimental.pallas import tpu as pltpu

# ---- config (mirrors the PyTorch `args`) ----
B = 2             # batch
M = 8             # sequence block length of `h`
ATTN_LIM = 8      # L = args.attn_lim: each position attends to the previous L positions
HID = 32          # args.hid_sz
NHEADS = 2        # args.nheads
HEAD_DIM = 16     # args.head_dim
INNER = 64        # args.inner_hid_sz (FeedForwardLayer)
LN_EPS = 1e-5
NEG_INF = -1e30
# args.dropout -> identity (eval mode), args.pre_norm = False (post-norm path)
# TODO(synk): args.adapt_span=True path (AdaptiveSpan soft masking / trim_memory) not implemented.


# ----------------------------------------------------------------------------
# Single fused Pallas kernel: the whole layer for `bb` batch elements per grid step
# ----------------------------------------------------------------------------
def fused_layer_kernel(hm_ref, wqkv_ref, kpe_ref, rep_ref, bd_ref, msk_ref,
                       wo_ref, w1_ref, w2_ref, vec_ref, o_ref,
                       *, bb, seq, span, nheads, hdim, hid, inner):
    width = span + seq
    kd = nheads * hdim
    bm = bb * seq               # rows of the current block (queries / residual stream)
    bw = bb * width             # rows of the memory (keys / values)

    hm = hm_ref[...]                                                        # (bw, hid)

    # fused Q/K/V projection: ONE MXU matmul over every memory row
    qkv = jnp.dot(hm, wqkv_ref[...], preferred_element_type=jnp.float32)    # (bw, 3*kd)
    k = qkv[:, kd:2 * kd]                                                   # (bw, kd)
    v = qkv[:, 2 * kd:3 * kd]                                               # (bw, kd)

    # current-block rows of q and of the residual stream (static slices, unrolled over bb)
    q_parts, h_parts = [], []
    for bl in range(bb):
        base = bl * width
        q_parts.append(qkv[base + span:base + width, 0:kd])
        h_parts.append(hm[base + span:base + width, :])
    q = q_parts[0] if bb == 1 else jnp.concatenate(q_parts, axis=0)         # (bm, kd)
    h_cur = h_parts[0] if bb == 1 else jnp.concatenate(h_parts, axis=0)     # (bm, hid)

    # relative-position logits for BOTH heads (and every folded batch row) in 2 MXU ops:
    #   qblk[r, r*kd + c] = q[r, c]    (one-hot row expansion: q @ rep, masked block-diag)
    #   pe_all = qblk @ kpe_all ;  pe_all[r, h*bw + b'*width + j] = q_h[r] . key_pe[:, j - i]
    qblk = jnp.dot(q, rep_ref[...], preferred_element_type=jnp.float32) * bd_ref[...]
    pe_all = jnp.dot(qblk, kpe_ref[...], preferred_element_type=jnp.float32)  # (bm, nheads*bw)

    neg = msk_ref[...]                                                      # (bm, bw) band mask
    scale = 1.0 / math.sqrt(hdim)

    head_outs = []
    for hh in range(nheads):        # nheads=2, unrolled; heads sliced from packed lane dim
        lo = hh * hdim
        qh = q[:, lo:lo + hdim]                                             # (bm, hdim)
        kh = k[:, lo:lo + hdim]                                             # (bw, hdim)
        vh = v[:, lo:lo + hdim]                                             # (bw, hdim)
        s = jax.lax.dot_general(qh, kh, (((1,), (1,)), ((), ())),
                                preferred_element_type=jnp.float32)         # (bm, bw)
        logits = (s + pe_all[:, hh * bw:(hh + 1) * bw]) * scale + neg
        mx = jnp.max(logits, axis=-1, keepdims=True)
        e = jnp.exp(logits - mx)
        p = e * pl.reciprocal(jnp.sum(e, axis=-1, keepdims=True), approx=True)
        head_outs.append(jnp.dot(p, vh, preferred_element_type=jnp.float32))  # (bm, hdim)

    # single output projection over the lane-concatenated head outputs
    attn = jnp.dot(jnp.concatenate(head_outs, axis=-1), wo_ref[...],
                   preferred_element_type=jnp.float32)                      # (bm, hid)

    vec = vec_ref[...]                                                      # (6, inner) packed
    ln1_g, ln1_b = vec[0:1, :hid], vec[1:2, :hid]
    b2 = vec[2:3, :hid]
    ln2_g, ln2_b = vec[3:4, :hid], vec[4:5, :hid]
    b1 = vec[5:6, :inner]

    # post-norm residual 1: h2 = norm1(h + attn_out)
    x1 = h_cur + attn
    c1 = x1 - jnp.mean(x1, axis=-1, keepdims=True)
    h2 = (c1 * jax.lax.rsqrt(jnp.mean(c1 * c1, axis=-1, keepdims=True) + LN_EPS)
          * ln1_g + ln1_b)

    # FFN
    f = jnp.maximum(jnp.dot(h2, w1_ref[...], preferred_element_type=jnp.float32) + b1, 0.0)
    f = jnp.dot(f, w2_ref[...], preferred_element_type=jnp.float32) + b2

    # post-norm residual 2: out = norm2(h2 + ff)
    x2 = h2 + f
    c2 = x2 - jnp.mean(x2, axis=-1, keepdims=True)
    out = (c2 * jax.lax.rsqrt(jnp.mean(c2 * c2, axis=-1, keepdims=True) + LN_EPS)
           * ln2_g + ln2_b)
    # TODO(synk): hid=32 < 128 lanes -> masked stores; if HID scales keep it a multiple of 128.
    o_ref[...] = out.astype(o_ref.dtype)


# ----------------------------------------------------------------------------
# Wrapper helpers
# ----------------------------------------------------------------------------
def _batch_block_size(batch):
    """How many batch elements to fold into one grid step.
    Single-TensorCore chips (v2..v6e): fold the whole batch (saves per-step overhead and
    doubles sublane occupancy).  v7x has 2 TensorCores/chip: keep one element per grid step
    so the "parallel" grid axis is split across cores."""
    try:
        kind = jax.devices()[0].device_kind.lower()
    except Exception:
        kind = ""
    if "v7" in kind or "7x" in kind:
        return 1
    return batch


def _build_constants(key_pe, bb, m, span, nheads, hdim):
    width = span + m
    kd = nheads * hdim
    R = bb * m * kd                      # cols of rep_all / rows of kpe_all
    C = nheads * bb * width              # cols of pe_all ( [head0 | head1] column blocks )

    # rep_all: (q @ rep_all)[r, r'*kd + c] = q[r, c]
    rep_all = np.tile(np.eye(kd, dtype=np.float32), (1, bb * m))            # (kd, R)
    # bd_all: keep only the r'==r block of the expansion above
    bd_all = (np.arange(R)[None, :] // kd ==
              np.arange(bb * m)[:, None]).astype(np.float32)                # (bb*m, R)

    # kpe_all: block-diagonal (per row-batch, per head) pre-skewed positional embeddings
    rr = np.arange(R)
    r_row, c_row = rr // kd, rr % kd
    b_row, i_row = r_row // m, r_row % m
    h_row, d_row = c_row // hdim, c_row % hdim
    cc = np.arange(C)
    h_col = cc // (bb * width)
    b_col = (cc % (bb * width)) // width
    j_col = cc % width
    rel = j_col[None, :] - i_row[:, None]                                   # (R, C)
    valid = ((h_col[None, :] == h_row[:, None]) &
             (b_col[None, :] == b_row[:, None]) &
             (rel >= 0) & (rel < span))
    rel_c = np.clip(rel, 0, span - 1)
    kpe_all = jnp.where(jnp.asarray(valid),
                        key_pe[d_row[:, None], rel_c],
                        0.0).astype(jnp.float32)                            # (R, C)

    # additive band mask, block-diagonal across the folded batch
    bi = np.arange(bb * m)
    bj = np.arange(bb * width)
    rel2 = (bj % width)[None, :] - (bi % m)[:, None]
    ok = ((bj // width)[None, :] == (bi // m)[:, None]) & (rel2 >= 0) & (rel2 < span)
    mask_add = jnp.asarray(np.where(ok, 0.0, NEG_INF).astype(np.float32))   # (bb*m, bb*width)

    return jnp.asarray(rep_all), jnp.asarray(bd_all), kpe_all, mask_add


# ----------------------------------------------------------------------------
# TransformerSeqLayer forward (post-norm path, adapt_span=False, dropout=0)
# ----------------------------------------------------------------------------
def transformer_seq_layer(h, h_prev, p):
    b, m, hid = h.shape
    span = h_prev.shape[1]
    width = span + m
    kd = NHEADS * HEAD_DIM

    bb = _batch_block_size(b)
    assert b % bb == 0
    grid = (b // bb,)

    # memory = [h_prev ; h] pre-concatenated once in HBM, flattened to rows x features
    hm = jnp.concatenate([h_prev, h], axis=1).reshape(b * width, hid)

    # fused QKV weight (one-time, tiny)
    wqkv = jnp.concatenate([p["wq"], p["wk"], p["wv"]], axis=1)             # (hid, 3*kd)

    rep_all, bd_all, kpe_all, mask_add = _build_constants(
        p["key_pe"], bb, m, span, NHEADS, HEAD_DIM)

    # pack the 6 tiny bias / LayerNorm vectors into one (6, INNER) input
    def _row(v):
        return jnp.pad(v, ((0, 0), (0, INNER - v.shape[-1])))
    vec_pack = jnp.concatenate([_row(p["ln1_g"]), _row(p["ln1_b"]), _row(p["b2"]),
                                _row(p["ln2_g"]), _row(p["ln2_b"]), p["b1"]], axis=0)

    kern = functools.partial(fused_layer_kernel, bb=bb, seq=m, span=span,
                             nheads=NHEADS, hdim=HEAD_DIM, hid=hid, inner=INNER)
    const = lambda shape: pl.BlockSpec(shape, lambda i: (0, 0))

    out2 = pl.pallas_call(
        kern,
        out_shape=jax.ShapeDtypeStruct((b * m, hid), h.dtype),
        grid=grid,
        in_specs=[
            pl.BlockSpec((bb * width, hid), lambda i: (i, 0)),              # hm rows
            const((hid, 3 * kd)),                                           # wqkv
            const((bb * m * kd, NHEADS * bb * width)),                      # kpe_all (pre-skewed)
            const((kd, bb * m * kd)),                                       # rep_all
            const((bb * m, bb * m * kd)),                                   # bd_all
            const((bb * m, bb * width)),                                    # mask_add
            const((kd, hid)),                                               # wo
            const((hid, INNER)),                                            # w1
            const((INNER, hid)),                                            # w2
            const((6, INNER)),                                              # packed vectors
        ],
        out_specs=pl.BlockSpec((bb * m, hid), lambda i: (i, 0)),
        compiler_params=pltpu.CompilerParams(
            dimension_semantics=("parallel",),
            vmem_limit_bytes=8 * 1024 * 1024,
        ),
    )(hm, wqkv, kpe_all, rep_all, bd_all, mask_add,
      p["wo"], p["w1"], p["w2"], vec_pack)

    return out2.reshape(b, m, hid), 0.0                                     # (out, aux_loss)


# ----------------------------------------------------------------------------
# Pure-JAX reference (direct port of the PyTorch skew/unskew formulation)
# ----------------------------------------------------------------------------
def _ref_unskew(x, m, span):
    bh = x.shape[0]
    x = x.reshape(bh, -1)
    x = jnp.pad(x, ((0, 0), (0, m)))
    x = x.reshape(bh, m, span + m + 1)
    return x[:, :, :span]


def _ref_skew(x, m, span):
    bh = x.shape[0]
    x = jnp.pad(x, ((0, 0), (0, 0), (0, m + 1)))
    x = x.reshape(bh, -1)[:, :-m]
    return x.reshape(bh, m, span + m)


def _ref_layernorm(x, g, b):
    mean = jnp.mean(x, axis=-1, keepdims=True)
    c = x - mean
    var = jnp.mean(c * c, axis=-1, keepdims=True)
    return c * jax.lax.rsqrt(var + LN_EPS) * g + b


def reference_forward(h, h_prev, p):
    b, m, hid = h.shape
    span = h_prev.shape[1]
    k_heads, d = NHEADS, HEAD_DIM
    hm = jnp.concatenate([h_prev, h], axis=1)

    def headify(x, s):
        return x.reshape(b, s, k_heads, d).transpose(0, 2, 1, 3).reshape(b * k_heads, s, d)

    q = headify(h @ p["wq"], m)
    k = headify(hm @ p["wk"], span + m)
    v = headify(hm @ p["wv"], span + m)

    attn = q @ jnp.swapaxes(k, -1, -2)
    attn = _ref_unskew(attn, m, span)
    attn = attn + q @ p["key_pe"]
    attn = attn / math.sqrt(d)
    attn = jax.nn.softmax(attn, axis=-1)
    out = _ref_skew(attn, m, span) @ v
    out = out.reshape(b, k_heads, m, d).transpose(0, 2, 1, 3).reshape(b, m, k_heads * d)
    out = out @ p["wo"]

    h2 = _ref_layernorm(h + out, p["ln1_g"], p["ln1_b"])
    ff = jnp.maximum(h2 @ p["w1"] + p["b1"], 0.0) @ p["w2"] + p["b2"]
    return _ref_layernorm(h2 + ff, p["ln2_g"], p["ln2_b"])


# ----------------------------------------------------------------------------
def init_params(key):
    ks = jax.random.split(key, 12)
    kd = NHEADS * HEAD_DIM

    def w(k, shape, fan_in):
        return (jax.random.normal(k, shape, jnp.float32) / math.sqrt(fan_in))

    return dict(
        wq=w(ks[0], (HID, kd), HID),
        wk=w(ks[1], (HID, kd), HID),
        wv=w(ks[2], (HID, kd), HID),
        wo=w(ks[3], (kd, HID), kd),
        key_pe=w(ks[4], (HEAD_DIM, ATTN_LIM), HEAD_DIM),   # pos_emb shape (1, head_dim, attn_lim)
        w1=w(ks[5], (HID, INNER), HID),
        b1=0.1 * jax.random.normal(ks[6], (1, INNER), jnp.float32),
        w2=w(ks[7], (INNER, HID), INNER),
        b2=0.1 * jax.random.normal(ks[8], (1, HID), jnp.float32),
        ln1_g=1.0 + 0.1 * jax.random.normal(ks[9], (1, HID), jnp.float32),
        ln1_b=0.1 * jax.random.normal(ks[10], (1, HID), jnp.float32),
        ln2_g=jnp.ones((1, HID), jnp.float32),
        ln2_b=jnp.zeros((1, HID), jnp.float32),
    )


if __name__ == "__main__":
    key = jax.random.PRNGKey(0)
    k_h, k_prev, k_par = jax.random.split(key, 3)
    h = jax.random.normal(k_h, (B, M, HID), jnp.float32)
    h_prev = jax.random.normal(k_prev, (B, ATTN_LIM, HID), jnp.float32)
    params = init_params(k_par)

    out, aux_loss = transformer_seq_layer(h, h_prev, params)
    out = jax.block_until_ready(out)

    ref = reference_forward(h, h_prev, params)
    if not bool(jnp.allclose(out, ref, atol=2e-3, rtol=2e-3)):
        raise AssertionError(
            f"mismatch vs reference, max abs diff = {float(jnp.max(jnp.abs(out - ref)))}")
    print("KERNEL_OK")
</pallas_src>

<mosaic_0001>
module attributes {stable_mosaic.version = 11 : i64} {
  func.func @fused_layer_kernel(%arg0: i32, %arg1: memref<32x32xf32, #tpu.memory_space<vmem>>, %arg2: memref<32x96xf32, #tpu.memory_space<vmem>>, %arg3: memref<512x64xf32, #tpu.memory_space<vmem>>, %arg4: memref<32x512xf32, #tpu.memory_space<vmem>>, %arg5: memref<16x512xf32, #tpu.memory_space<vmem>>, %arg6: memref<16x32xf32, #tpu.memory_space<vmem>>, %arg7: memref<32x32xf32, #tpu.memory_space<vmem>>, %arg8: memref<32x64xf32, #tpu.memory_space<vmem>>, %arg9: memref<64x32xf32, #tpu.memory_space<vmem>>, %arg10: memref<6x64xf32, #tpu.memory_space<vmem>>, %arg11: memref<16x32xf32, #tpu.memory_space<vmem>>) attributes {dimension_semantics = [#tpu.dimension_semantics<parallel>], iteration_bounds = array<i64: 1>, scalar_prefetch = 0 : i64, scratch_operands = 0 : i64, tpu.core_type = #tpu.core_type<tc>, window_params = [{transform_indices = @transform_0, window_bounds = array<i64: 32, 32>}, {pipeline_mode = #tpu.pipeline_mode<synchronous>, transform_indices = @transform_1, window_bounds = array<i64: 32, 96>}, {pipeline_mode = #tpu.pipeline_mode<synchronous>, transform_indices = @transform_2, window_bounds = array<i64: 512, 64>}, {pipeline_mode = #tpu.pipeline_mode<synchronous>, transform_indices = @transform_3, window_bounds = array<i64: 32, 512>}, {pipeline_mode = #tpu.pipeline_mode<synchronous>, transform_indices = @transform_4, window_bounds = array<i64: 16, 512>}, {pipeline_mode = #tpu.pipeline_mode<synchronous>, transform_indices = @transform_5, window_bounds = array<i64: 16, 32>}, {pipeline_mode = #tpu.pipeline_mode<synchronous>, transform_indices = @transform_6, window_bounds = array<i64: 32, 32>}, {pipeline_mode = #tpu.pipeline_mode<synchronous>, transform_indices = @transform_7, window_bounds = array<i64: 32, 64>}, {pipeline_mode = #tpu.pipeline_mode<synchronous>, transform_indices = @transform_8, window_bounds = array<i64: 64, 32>}, {pipeline_mode = #tpu.pipeline_mode<synchronous>, transform_indices = @transform_9, window_bounds = array<i64: 6, 64>}, {transform_indices = @transform_10, window_bounds = array<i64: 16, 32>}]} {
    %c0 = arith.constant 0 : index
    %c0_0 = arith.constant 0 : index
    %0 = vector.load %arg1[%c0, %c0_0] : memref<32x32xf32, #tpu.memory_space<vmem>>, vector<32x32xf32>
    %c0_1 = arith.constant 0 : index
    %c0_2 = arith.constant 0 : index
    %1 = vector.load %arg2[%c0_1, %c0_2] : memref<32x96xf32, #tpu.memory_space<vmem>>, vector<32x96xf32>
    %cst = arith.constant dense<0.000000e+00> : vector<32x96xf32>
    %2 = tpu.matmul %0, %1, %cst {dimension_numbers = #tpu.dot_dimension_numbers<[1], [0], [0], [1], [0, 0, 1, 1], [], []>} : vector<32x32xf32>, vector<32x96xf32>, vector<32x96xf32> -> vector<32x96xf32>
    %3 = vector.extract_strided_slice %2 {offsets = [0, 32], sizes = [32, 32], strides = [1, 1]} : vector<32x96xf32> to vector<32x32xf32>
    %4 = vector.extract_strided_slice %2 {offsets = [0, 64], sizes = [32, 32], strides = [1, 1]} : vector<32x96xf32> to vector<32x32xf32>
    %5 = vector.extract_strided_slice %2 {offsets = [8, 0], sizes = [8, 32], strides = [1, 1]} : vector<32x96xf32> to vector<8x32xf32>
    %6 = vector.extract_strided_slice %0 {offsets = [8, 0], sizes = [8, 32], strides = [1, 1]} : vector<32x32xf32> to vector<8x32xf32>
    %7 = vector.extract_strided_slice %2 {offsets = [24, 0], sizes = [8, 32], strides = [1, 1]} : vector<32x96xf32> to vector<8x32xf32>
    %8 = vector.extract_strided_slice %0 {offsets = [24, 0], sizes = [8, 32], strides = [1, 1]} : vector<32x32xf32> to vector<8x32xf32>
    %9 = tpu.concatenate %5, %7 in 0 : vector<8x32xf32>, vector<8x32xf32> -> vector<16x32xf32>
    %10 = tpu.concatenate %6, %8 in 0 : vector<8x32xf32>, vector<8x32xf32> -> vector<16x32xf32>
    %c0_3 = arith.constant 0 : index
    %c0_4 = arith.constant 0 : index
    %11 = vector.load %arg4[%c0_3, %c0_4] : memref<32x512xf32, #tpu.memory_space<vmem>>, vector<32x512xf32>
    %cst_5 = arith.constant dense<0.000000e+00> : vector<16x512xf32>
    %12 = tpu.matmul %9, %11, %cst_5 {dimension_numbers = #tpu.dot_dimension_numbers<[1], [0], [0], [1], [0, 0, 1, 1], [], []>} : vector<16x32xf32>, vector<32x512xf32>, vector<16x512xf32> -> vector<16x512xf32>
    %c0_6 = arith.constant 0 : index
    %c0_7 = arith.constant 0 : index
    %13 = vector.load %arg5[%c0_6, %c0_7] : memref<16x512xf32, #tpu.memory_space<vmem>>, vector<16x512xf32>
    %14 = arith.mulf %12, %13 : vector<16x512xf32>
    %c0_8 = arith.constant 0 : index
    %c0_9 = arith.constant 0 : index
    %15 = vector.load %arg3[%c0_8, %c0_9] : memref<512x64xf32, #tpu.memory_space<vmem>>, vector<512x64xf32>
    %cst_10 = arith.constant dense<0.000000e+00> : vector<16x64xf32>
    %16 = tpu.matmul %14, %15, %cst_10 {dimension_numbers = #tpu.dot_dimension_numbers<[1], [0], [0], [1], [0, 0, 1, 1], [], []>} : vector<16x512xf32>, vector<512x64xf32>, vector<16x64xf32> -> vector<16x64xf32>
    %c0_11 = arith.constant 0 : index
    %c0_12 = arith.constant 0 : index
    %17 = vector.load %arg6[%c0_11, %c0_12] : memref<16x32xf32, #tpu.memory_space<vmem>>, vector<16x32xf32>
    %18 = vector.extract_strided_slice %9 {offsets = [0, 0], sizes = [16, 16], strides = [1, 1]} : vector<16x32xf32> to vector<16x16xf32>
    %19 = vector.extract_strided_slice %3 {offsets = [0, 0], sizes = [32, 16], strides = [1, 1]} : vector<32x32xf32> to vector<32x16xf32>
    %20 = vector.extract_strided_slice %4 {offsets = [0, 0], sizes = [32, 16], strides = [1, 1]} : vector<32x32xf32> to vector<32x16xf32>
    %cst_13 = arith.constant dense<0.000000e+00> : vector<16x32xf32>
    %21 = tpu.matmul %18, %19, %cst_13 {dimension_numbers = #tpu.dot_dimension_numbers<[1], [1], [0], [0], [0, 0, 1, 0], [], []>} : vector<16x16xf32>, vector<32x16xf32>, vector<16x32xf32> -> vector<16x32xf32>
    %22 = vector.extract_strided_slice %16 {offsets = [0, 0], sizes = [16, 32], strides = [1, 1]} : vector<16x64xf32> to vector<16x32xf32>
    %23 = arith.addf %21, %22 : vector<16x32xf32>
    %cst_14 = arith.constant 2.500000e-01 : f32
    %24 = vector.broadcast %cst_14 : f32 to vector<16x32xf32>
    %25 = arith.mulf %23, %24 : vector<16x32xf32>
    %26 = arith.addf %25, %17 : vector<16x32xf32>
    %cst_15 = arith.constant dense<0xFF800000> : vector<16xf32>
    %27 = vector.multi_reduction <maximumf>, %26, %cst_15 [1] : vector<16x32xf32> to vector<16xf32>
    %28 = vector.shape_cast %27 : vector<16xf32> to vector<16x1xf32>
    %29 = vector.broadcast %28 : vector<16x1xf32> to vector<16x32xf32>
    %30 = arith.subf %26, %29 : vector<16x32xf32>
    %31 = math.exp %30 : vector<16x32xf32>
    %cst_16 = arith.constant dense<0.000000e+00> : vector<16xf32>
    %32 = vector.multi_reduction <add>, %31, %cst_16 [1] : vector<16x32xf32> to vector<16xf32>
    %33 = vector.shape_cast %32 : vector<16xf32> to vector<16x1xf32>
    %34 = tpu.reciprocal %33 {approx = true} : vector<16x1xf32> -> vector<16x1xf32>
    %35 = vector.broadcast %34 : vector<16x1xf32> to vector<16x32xf32>
    %36 = arith.mulf %31, %35 : vector<16x32xf32>
    %cst_17 = arith.constant dense<0.000000e+00> : vector<16x16xf32>
    %37 = tpu.matmul %36, %20, %cst_17 {dimension_numbers = #tpu.dot_dimension_numbers<[1], [0], [0], [1], [0, 0, 1, 1], [], []>} : vector<16x32xf32>, vector<32x16xf32>, vector<16x16xf32> -> vector<16x16xf32>
    %38 = vector.extract_strided_slice %9 {offsets = [0, 16], sizes = [16, 16], strides = [1, 1]} : vector<16x32xf32> to vector<16x16xf32>
    %39 = vector.extract_strided_slice %3 {offsets = [0, 16], sizes = [32, 16], strides = [1, 1]} : vector<32x32xf32> to vector<32x16xf32>
    %40 = vector.extract_strided_slice %4 {offsets = [0, 16], sizes = [32, 16], strides = [1, 1]} : vector<32x32xf32> to vector<32x16xf32>
    %cst_18 = arith.constant dense<0.000000e+00> : vector<16x32xf32>
    %41 = tpu.matmul %38, %39, %cst_18 {dimension_numbers = #tpu.dot_dimension_numbers<[1], [1], [0], [0], [0, 0, 1, 0], [], []>} : vector<16x16xf32>, vector<32x16xf32>, vector<16x32xf32> -> vector<16x32xf32>
    %42 = vector.extract_strided_slice %16 {offsets = [0, 32], sizes = [16, 32], strides = [1, 1]} : vector<16x64xf32> to vector<16x32xf32>
    %43 = arith.addf %41, %42 : vector<16x32xf32>
    %cst_19 = arith.constant 2.500000e-01 : f32
    %44 = vector.broadcast %cst_19 : f32 to vector<16x32xf32>
    %45 = arith.mulf %43, %44 : vector<16x32xf32>
    %46 = arith.addf %45, %17 : vector<16x32xf32>
    %cst_20 = arith.constant dense<0xFF800000> : vector<16xf32>
    %47 = vector.multi_reduction <maximumf>, %46, %cst_20 [1] : vector<16x32xf32> to vector<16xf32>
    %48 = vector.shape_cast %47 : vector<16xf32> to vector<16x1xf32>
    %49 = vector.broadcast %48 : vector<16x1xf32> to vector<16x32xf32>
    %50 = arith.subf %46, %49 : vector<16x32xf32>
    %51 = math.exp %50 : vector<16x32xf32>
    %cst_21 = arith.constant dense<0.000000e+00> : vector<16xf32>
    %52 = vector.multi_reduction <add>, %51, %cst_21 [1] : vector<16x32xf32> to vector<16xf32>
    %53 = vector.shape_cast %52 : vector<16xf32> to vector<16x1xf32>
    %54 = tpu.reciprocal %53 {approx = true} : vector<16x1xf32> -> vector<16x1xf32>
    %55 = vector.broadcast %54 : vector<16x1xf32> to vector<16x32xf32>
    %56 = arith.mulf %51, %55 : vector<16x32xf32>
    %cst_22 = arith.constant dense<0.000000e+00> : vector<16x16xf32>
    %57 = tpu.matmul %56, %40, %cst_22 {dimension_numbers = #tpu.dot_dimension_numbers<[1], [0], [0], [1], [0, 0, 1, 1], [], []>} : vector<16x32xf32>, vector<32x16xf32>, vector<16x16xf32> -> vector<16x16xf32>
    %58 = tpu.concatenate %37, %57 in 1 : vector<16x16xf32>, vector<16x16xf32> -> vector<16x32xf32>
    %c0_23 = arith.constant 0 : index
    %c0_24 = arith.constant 0 : index
    %59 = vector.load %arg7[%c0_23, %c0_24] : memref<32x32xf32, #tpu.memory_space<vmem>>, vector<32x32xf32>
    %cst_25 = arith.constant dense<0.000000e+00> : vector<16x32xf32>
    %60 = tpu.matmul %58, %59, %cst_25 {dimension_numbers = #tpu.dot_dimension_numbers<[1], [0], [0], [1], [0, 0, 1, 1], [], []>} : vector<16x32xf32>, vector<32x32xf32>, vector<16x32xf32> -> vector<16x32xf32>
    %c0_26 = arith.constant 0 : index
    %c0_27 = arith.constant 0 : index
    %61 = vector.load %arg10[%c0_26, %c0_27] : memref<6x64xf32, #tpu.memory_space<vmem>>, vector<6x64xf32>
    %62 = vector.extract_strided_slice %61 {offsets = [0, 0], sizes = [1, 32], strides = [1, 1]} : vector<6x64xf32> to vector<1x32xf32>
    %63 = vector.extract_strided_slice %61 {offsets = [1, 0], sizes = [1, 32], strides = [1, 1]} : vector<6x64xf32> to vector<1x32xf32>
    %64 = vector.extract_strided_slice %61 {offsets = [2, 0], sizes = [1, 32], strides = [1, 1]} : vector<6x64xf32> to vector<1x32xf32>
    %65 = vector.extract_strided_slice %61 {offsets = [3, 0], sizes = [1, 32], strides = [1, 1]} : vector<6x64xf32> to vector<1x32xf32>
    %66 = vector.extract_strided_slice %61 {offsets = [4, 0], sizes = [1, 32], strides = [1, 1]} : vector<6x64xf32> to vector<1x32xf32>
    %67 = vector.extract_strided_slice %61 {offsets = [5, 0], sizes = [1, 64], strides = [1, 1]} : vector<6x64xf32> to vector<1x64xf32>
    %68 = arith.addf %10, %60 : vector<16x32xf32>
    %cst_28 = arith.constant dense<0.000000e+00> : vector<16xf32>
    %69 = vector.multi_reduction <add>, %68, %cst_28 [1] : vector<16x32xf32> to vector<16xf32>
    %70 = vector.shape_cast %69 : vector<16xf32> to vector<16x1xf32>
    %cst_29 = arith.constant 3.200000e+01 : f32
    %71 = vector.broadcast %cst_29 : f32 to vector<16x1xf32>
    %72 = arith.divf %70, %71 : vector<16x1xf32>
    %73 = vector.broadcast %72 : vector<16x1xf32> to vector<16x32xf32>
    %74 = arith.subf %68, %73 : vector<16x32xf32>
    %75 = arith.mulf %74, %74 : vector<16x32xf32>
    %cst_30 = arith.constant dense<0.000000e+00> : vector<16xf32>
    %76 = vector.multi_reduction <add>, %75, %cst_30 [1] : vector<16x32xf32> to vector<16xf32>
    %77 = vector.shape_cast %76 : vector<16xf32> to vector<16x1xf32>
    %cst_31 = arith.constant 3.200000e+01 : f32
    %78 = vector.broadcast %cst_31 : f32 to vector<16x1xf32>
    %79 = arith.divf %77, %78 : vector<16x1xf32>
    %cst_32 = arith.constant 9.99999974E-6 : f32
    %80 = vector.broadcast %cst_32 : f32 to vector<16x1xf32>
    %81 = arith.addf %79, %80 : vector<16x1xf32>
    %82 = math.rsqrt %81 : vector<16x1xf32>
    %83 = vector.broadcast %82 : vector<16x1xf32> to vector<16x32xf32>
    %84 = arith.mulf %74, %83 : vector<16x32xf32>
    %85 = vector.broadcast %62 : vector<1x32xf32> to vector<16x32xf32>
    %86 = arith.mulf %84, %85 : vector<16x32xf32>
    %87 = vector.broadcast %63 : vector<1x32xf32> to vector<16x32xf32>
    %88 = arith.addf %86, %87 : vector<16x32xf32>
    %c0_33 = arith.constant 0 : index
    %c0_34 = arith.constant 0 : index
    %89 = vector.load %arg8[%c0_33, %c0_34] : memref<32x64xf32, #tpu.memory_space<vmem>>, vector<32x64xf32>
    %cst_35 = arith.constant dense<0.000000e+00> : vector<16x64xf32>
    %90 = tpu.matmul %88, %89, %cst_35 {dimension_numbers = #tpu.dot_dimension_numbers<[1], [0], [0], [1], [0, 0, 1, 1], [], []>} : vector<16x32xf32>, vector<32x64xf32>, vector<16x64xf32> -> vector<16x64xf32>
    %91 = vector.broadcast %67 : vector<1x64xf32> to vector<16x64xf32>
    %92 = arith.addf %90, %91 : vector<16x64xf32>
    %cst_36 = arith.constant 0.000000e+00 : f32
    %93 = vector.broadcast %cst_36 : f32 to vector<16x64xf32>
    %94 = arith.maximumf %92, %93 : vector<16x64xf32>
    %c0_37 = arith.constant 0 : index
    %c0_38 = arith.constant 0 : index
    %95 = vector.load %arg9[%c0_37, %c0_38] : memref<64x32xf32, #tpu.memory_space<vmem>>, vector<64x32xf32>
    %cst_39 = arith.constant dense<0.000000e+00> : vector<16x32xf32>
    %96 = tpu.matmul %94, %95, %cst_39 {dimension_numbers = #tpu.dot_dimension_numbers<[1], [0], [0], [1], [0, 0, 1, 1], [], []>} : vector<16x64xf32>, vector<64x32xf32>, vector<16x32xf32> -> vector<16x32xf32>
    %97 = vector.broadcast %64 : vector<1x32xf32> to vector<16x32xf32>
    %98 = arith.addf %96, %97 : vector<16x32xf32>
    %99 = arith.addf %88, %98 : vector<16x32xf32>
    %cst_40 = arith.constant dense<0.000000e+00> : vector<16xf32>
    %100 = vector.multi_reduction <add>, %99, %cst_40 [1] : vector<16x32xf32> to vector<16xf32>
    %101 = vector.shape_cast %100 : vector<16xf32> to vector<16x1xf32>
    %cst_41 = arith.constant 3.200000e+01 : f32
    %102 = vector.broadcast %cst_41 : f32 to vector<16x1xf32>
    %103 = arith.divf %101, %102 : vector<16x1xf32>
    %104 = vector.broadcast %103 : vector<16x1xf32> to vector<16x32xf32>
    %105 = arith.subf %99, %104 : vector<16x32xf32>
    %106 = arith.mulf %105, %105 : vector<16x32xf32>
    %cst_42 = arith.constant dense<0.000000e+00> : vector<16xf32>
    %107 = vector.multi_reduction <add>, %106, %cst_42 [1] : vector<16x32xf32> to vector<16xf32>
    %108 = vector.shape_cast %107 : vector<16xf32> to vector<16x1xf32>
    %cst_43 = arith.constant 3.200000e+01 : f32
    %109 = vector.broadcast %cst_43 : f32 to vector<16x1xf32>
    %110 = arith.divf %108, %109 : vector<16x1xf32>
    %cst_44 = arith.constant 9.99999974E-6 : f32
    %111 = vector.broadcast %cst_44 : f32 to vector<16x1xf32>
    %112 = arith.addf %110, %111 : vector<16x1xf32>
    %113 = math.rsqrt %112 : vector<16x1xf32>
    %114 = vector.broadcast %113 : vector<16x1xf32> to vector<16x32xf32>
    %115 = arith.mulf %105, %114 : vector<16x32xf32>
    %116 = vector.broadcast %65 : vector<1x32xf32> to vector<16x32xf32>
    %117 = arith.mulf %115, %116 : vector<16x32xf32>
    %118 = vector.broadcast %66 : vector<1x32xf32> to vector<16x32xf32>
    %119 = arith.addf %117, %118 : vector<16x32xf32>
    %c0_45 = arith.constant 0 : index
    %c0_46 = arith.constant 0 : index
    %120 = vector.load %arg11[%c0_45, %c0_46] : memref<16x32xf32, #tpu.memory_space<vmem>>, vector<16x32xf32>
    tpu.vector_store %arg11[%c0_45, %c0_46], %119 {strides = array<i32>} : memref<16x32xf32, #tpu.memory_space<vmem>>, vector<16x32xf32>,
    return
  }
  func.func @transform_0(%arg0: i32) -> (i32, i32) {
    %c0_i32 = arith.constant 0 : i32
    %c0_i32_0 = arith.constant 0 : i32
    return %arg0, %c0_i32 : i32, i32
  }
  func.func @transform_1(%arg0: i32) -> (i32, i32) {
    %c0_i32 = arith.constant 0 : i32
    %c0_i32_0 = arith.constant 0 : i32
    %c0_i32_1 = arith.constant 0 : i32
    return %c0_i32, %c0_i32_0 : i32, i32
  }
  func.func @transform_2(%arg0: i32) -> (i32, i32) {
    %c0_i32 = arith.constant 0 : i32
    %c0_i32_0 = arith.constant 0 : i32
    %c0_i32_1 = arith.constant 0 : i32
    return %c0_i32, %c0_i32_0 : i32, i32
  }
  func.func @transform_3(%arg0: i32) -> (i32, i32) {
    %c0_i32 = arith.constant 0 : i32
    %c0_i32_0 = arith.constant 0 : i32
    %c0_i32_1 = arith.constant 0 : i32
    return %c0_i32, %c0_i32_0 : i32, i32
  }
  func.func @transform_4(%arg0: i32) -> (i32, i32) {
    %c0_i32 = arith.constant 0 : i32
    %c0_i32_0 = arith.constant 0 : i32
    %c0_i32_1 = arith.constant 0 : i32
    return %c0_i32, %c0_i32_0 : i32, i32
  }
  func.func @transform_5(%arg0: i32) -> (i32, i32) {
    %c0_i32 = arith.constant 0 : i32
    %c0_i32_0 = arith.constant 0 : i32
    %c0_i32_1 = arith.constant 0 : i32
    return %c0_i32, %c0_i32_0 : i32, i32
  }
  func.func @transform_6(%arg0: i32) -> (i32, i32) {
    %c0_i32 = arith.constant 0 : i32
    %c0_i32_0 = arith.constant 0 : i32
    %c0_i32_1 = arith.constant 0 : i32
    return %c0_i32, %c0_i32_0 : i32, i32
  }
  func.func @transform_7(%arg0: i32) -> (i32, i32) {
    %c0_i32 = arith.constant 0 : i32
    %c0_i32_0 = arith.constant 0 : i32
    %c0_i32_1 = arith.constant 0 : i32
    return %c0_i32, %c0_i32_0 : i32, i32
  }
  func.func @transform_8(%arg0: i32) -> (i32, i32) {
    %c0_i32 = arith.constant 0 : i32
    %c0_i32_0 = arith.constant 0 : i32
    %c0_i32_1 = arith.constant 0 : i32
    return %c0_i32, %c0_i32_0 : i32, i32
  }
  func.func @transform_9(%arg0: i32) -> (i32, i32) {
    %c0_i32 = arith.constant 0 : i32
    %c0_i32_0 = arith.constant 0 : i32
    %c0_i32_1 = arith.constant 0 : i32
    return %c0_i32, %c0_i32_0 : i32, i32
  }
  func.func @transform_10(%arg0: i32) -> (i32, i32) {
    %c0_i32 = arith.constant 0 : i32
    %c0_i32_0 = arith.constant 0 : i32
    return %arg0, %c0_i32 : i32, i32
  }
}

</mosaic_0001>

<bundles_post_ra>
// kernel: tpu_custom_call.1
= control target key start
LH: loop header
LB: loop body
LE: loop exit
PB: predicated region body
PF: predicated region fallthrough
CT: control target
= control target key end

     0   :  { %vm44_vm0 = vcmask 261120   ;;  %s2442_s0 = inlined_call_operand.vmem [shape: f32[32,32], index: 0, kind: input, shape index: {}]   ;;  %s2443_s1 = inlined_call_operand.vmem [shape: f32[32,96], index: 1, kind: input, shape index: {}]   ;;  %s2444_s2 = inlined_call_operand.vmem [shape: f32[512,64], index: 2, kind: input, shape index: {}]   ;;  %s2445_s3 = inlined_call_operand.vmem [shape: f32[32,512], index: 3, kind: input, shape index: {}]   ;;  %s2446_s4 = inlined_call_operand.vmem [shape: f32[16,512], index: 4, kind: input, shape index: {}]   ;;  %s2447_s5 = inlined_call_operand.vmem [shape: f32[16,32], index: 5, kind: input, shape index: {}]   ;;  %s2448_s6 = inlined_call_operand.vmem [shape: f32[32,32], index: 6, kind: input, shape index: {}]   ;;  %s2449_s7 = inlined_call_operand.vmem [shape: f32[32,64], index: 7, kind: input, shape index: {}]   ;;  %s2450_s8 = inlined_call_operand.vmem [shape: f32[64,32], index: 8, kind: input, shape index: {}]   ;;  %s2451_s9 = inlined_call_operand.vmem [shape: f32[6,64], index: 9, kind: input, shape index: {}]   ;;  %s2452_s10 = inlined_call_operand.hbm [shape: f32[16,32], index: 10, kind: output, shape index: {}]  }
   0x1   :  { %v40_v0 = vld [vmem:[%s2443_s1] sm:$0xff]  ;;  %v41_v1 = vld [vmem:[%s2443_s1 + $0x8] sm:$0xff]  ;;  %v42_v2 = vld [vmem:[%s2443_s1 + $0x10] sm:$0xff] }
   0x2   :  { %v1632_v3 = vpack.c.bf16 %v41_v1, %v40_v0  ;;  %v43_v4 = vld [vmem:[%s2443_s1 + $0x18] sm:$0xff]  ;;  %v36_v5 = vld [vmem:[%s2442_s0] sm:$0xff]  ;;  %v143_v7 = vld [vmem:[%s2445_s3 + $0x8] sm:$0xff] }
   0x3   :  { %v1636_v6 = vpack.c.bf16 %v43_v4, %v42_v2  ;;  %1541 = vmatprep.mubr.msk.f32.mxu0 %vm44_vm0, %v36_v5  ;;  %v147_v8 = vld [vmem:[%s2445_s3 + $0x28] sm:$0xff]  ;;  %v145_v9 = vld [vmem:[%s2445_s3 + $0x18] sm:$0xff]  ;;  %v142_v12 = vld [vmem:[%s2445_s3] sm:$0xff] }
   0x4   :  { %1633 = vmatprep.subr.bf16.mxu0 %v1632_v3  ;;  %v149_v10 = vld [vmem:[%s2445_s3 + $0x38] sm:$0xff]  ;;  %v1640_v11 = vpack.c.bf16 %v147_v8, %v143_v7  ;;  %v146_v13 = vld [vmem:[%s2445_s3 + $0x20] sm:$0xff]  ;;  %v144_v14 = vld [vmem:[%s2445_s3 + $0x10] sm:$0xff] }
   0x5   :  { %1635 = vmatpush3.bf16.msra.mxu0 %v1632_v3  ;;  %v1648_v15 = vpack.c.bf16 %v149_v10, %v145_v9  ;;  %v1642_v16 = vpack.c.bf16 %v146_v13, %v142_v12  ;;  %v148_v17 = vld [vmem:[%s2445_s3 + $0x30] sm:$0xff]  ;;  %v151_v18 = vld [vmem:[%s2445_s3 + $0x48] sm:$0xff]  ;;  %v153_v21 = vld [vmem:[%s2445_s3 + $0x58] sm:$0xff] }
   0x6   :  { %1637 = vmatprep.subr.bf16.mxu0 %v1636_v6  ;;  %v155_v19 = vld [vmem:[%s2445_s3 + $0x68] sm:$0xff]  ;;  %1641 = vmatprep.subr.bf16.mxu1 %v1640_v11  ;;  %v157_v22 = vld [vmem:[%s2445_s3 + $0x78] sm:$0xff]  ;;  %v150_v23 = vld [vmem:[%s2445_s3 + $0x40] sm:$0xff]  ;;  %v1650_v26 = vpack.c.bf16 %v148_v17, %v144_v14 }
   0x7   :  { %v1644_v20 = vpack.c.bf16 %v155_v19, %v151_v18  ;;  %1643 = vmatpush1.bf16.msra.mxu1 %v1642_v16  ;;  %v154_v24 = vld [vmem:[%s2445_s3 + $0x60] sm:$0xff]  ;;  %v2016_v25 = vld [vmem:[%s2442_s0 + $0x8] sm:$0xff] }
   0x8   :  { %v1646_v27 = vpack.c.bf16 %v154_v24, %v150_v23 }
   0x9   :  { %1639 = vmatpush3.bf16.msra.mxu0 %v1636_v6  ;;  %1645 = vmatprep.subr.bf16.mxu1 %v1644_v20 }
   0xa   :  { %15 = vsyncpa [#allocation3], 0  ;;  %v38_v28 = vld [vmem:[%s2442_s0 + $0x10] sm:$0xff]  ;;  %1649 = vmatprep.subr.bf16.mxu0 %v1648_v15  ;;  %v1652_v29 = vpack.c.bf16 %v157_v22, %v153_v21  ;;  %v2033_v32 = vld [vmem:[%s2442_s0 + $0x18] sm:$0xff]  ;;  %v1890_v34 = vmov 0.0   ;;  %s1891_s17 = smov 96  }
   0xb   :  { %v152_v30 = vld [vmem:[%s2445_s3 + $0x50] sm:$0xff]  ;;  %1647 = vmatpush1.bf16.msra.mxu1 %v1646_v27  ;;  %228 = vmatprep.mubr.f32.mxu1 %v1890_v34  ;;  %v350_v35 = vld [vmem:[%s2444_s2 + $0x80] sm:$0xff]  ;;  %v351_v36 = vld [vmem:[%s2444_s2 + $0x88] sm:$0xff]  ;;  %vm560_vm1 = vcmask 130048   ;;  %s1893_s29 = smov 112   ;;  %s1894_s30 = smov 80  }
   0xc   :  { %v156_v31 = vld [vmem:[%s2445_s3 + $0x70] sm:$0xff]  ;;  %1542 = vmatmul.mubr.msk.f32.vlgmr.msra.gmra.mrb[0].mxu0 %vm44_vm0, %v2016_v25  ;;  %v1656_v37 = vpack.c.bf16 %v351_v36, %v350_v35  ;;  %v334_v38 = vld [vmem:[%s2444_s2] sm:$0xff]  ;;  %v335_v39 = vld [vmem:[%s2444_s2 + $0x8] sm:$0xff]  ;;  %s1896_s3 = smov 16   ;;  %vm1233_vm3 = vcmask 523264  }
   0xd   :  { %1544 = vmatprep.mubr.msk.f32.mxu0 %vm44_vm0, %v38_v28  ;;  %1651 = vmatpush1.bf16.msra.mxu0 %v1650_v26  ;;  %v1654_v33 = vpack.c.bf16 %v156_v31, %v152_v30  ;;  %v352_v40 = vld [vmem:[%s2444_s2 + $0x90] sm:$0xff]  ;;  %v353_v41 = vld [vmem:[%s2444_s2 + $0x98] sm:$0xff]  ;;  %v382_v42 = vld [vmem:[%s2444_s2 + $0x180] sm:$0xff]  ;;  %v1658_v47 = vpack.c.bf16 %v335_v39, %v334_v38 }
   0xe   :  { %1653 = vmatprep.subr.bf16.mxu0 %v1652_v29  ;;  %1657 = vmatprep.subr.bf16.mxu1 %v1656_v37  ;;  %v383_v43 = vld [vmem:[%s2444_s2 + $0x188] sm:$0xff]  ;;  %v366_v44 = vld [vmem:[%s2444_s2 + $0x100] sm:$0xff]  ;;  %v336_v48 = vld [vmem:[%s2444_s2 + $0x10] sm:$0xff]  ;;  %v1660_v53 = vpack.c.bf16 %v353_v41, %v352_v40 }
   0xf   :  { %v1688_v45 = vpack.c.bf16 %v383_v43, %v382_v42  ;;  %v367_v46 = vld [vmem:[%s2444_s2 + $0x108] sm:$0xff]  ;;  %v384_v50 = vld [vmem:[%s2444_s2 + $0x190] sm:$0xff]  ;;  %v385_v51 = vld [vmem:[%s2444_s2 + $0x198] sm:$0xff] }
  0x10   :  { %1545 = vmatmul.mubr.msk.f32.gmra.mrb[2].mxu0 %vm44_vm0, %v2033_v32  ;;  %v1690_v49 = vpack.c.bf16 %v367_v46, %v366_v44  ;;  %v337_v54 = vld [vmem:[%s2444_s2 + $0x18] sm:$0xff]  ;;  %v368_v55 = vld [vmem:[%s2444_s2 + $0x110] sm:$0xff]  ;;  %v354_v58 = vld [vmem:[%s2444_s2 + $0xa0] sm:$0xff]  ;;  %v1692_v61 = vpack.c.bf16 %v385_v51, %v384_v50 }
  0x11   :  { %1655 = vmatpush1.bf16.msra.mxu0 %v1654_v33  ;;  %305 = vmatprep.mubr.f32.mxu0 %v1890_v34  ;;  %v369_v56 = vld [vmem:[%s2444_s2 + $0x118] sm:$0xff]  ;;  %v355_v59 = vld [vmem:[%s2444_s2 + $0xa8] sm:$0xff]  ;;  %v386_v62 = vld [vmem:[%s2444_s2 + $0x1a0] sm:$0xff]  ;;  %v1662_v0 = vpack.c.bf16 %v337_v54, %v336_v48 }
  0x12   :  { %1689 = vmatprep.subr.bf16.mxu0 %v1688_v45  ;;  %v387_v63 = vld [vmem:[%s2444_s2 + $0x1a8] sm:$0xff]  ;;  %v338_v1 = vld [vmem:[%s2444_s2 + $0x20] sm:$0xff]  ;;  %v1694_v3 = vpack.c.bf16 %v369_v56, %v368_v55  ;;  %v1664_v5 = vpack.c.bf16 %v355_v59, %v354_v58  ;;  %v356_v6 = vld [vmem:[%s2444_s2 + $0xb0] sm:$0xff] }
  0x13   :  { %v339_v2 = vld [vmem:[%s2444_s2 + $0x28] sm:$0xff]  ;;  %v370_v7 = vld [vmem:[%s2444_s2 + $0x120] sm:$0xff]  ;;  %v357_v10 = vld [vmem:[%s2444_s2 + $0xb8] sm:$0xff]  ;;  %v1696_v11 = vpack.c.bf16 %v387_v63, %v386_v62 }
  0x14   :  { %v371_v8 = vld [vmem:[%s2444_s2 + $0x128] sm:$0xff]  ;;  %v388_v12 = vld [vmem:[%s2444_s2 + $0x1b0] sm:$0xff]  ;;  %v389_v13 = vld [vmem:[%s2444_s2 + $0x1b8] sm:$0xff]  ;;  %v1666_v15 = vpack.c.bf16 %v339_v2, %v338_v1  ;;  %v1668_v19 = vpack.c.bf16 %v357_v10, %v356_v6 }
  0x15   :  { %v340_v16 = vld [vmem:[%s2444_s2 + $0x30] sm:$0xff]  ;;  %v341_v17 = vld [vmem:[%s2444_s2 + $0x38] sm:$0xff]  ;;  %v1698_v18 = vpack.c.bf16 %v371_v8, %v370_v7  ;;  %v358_v20 = vld [vmem:[%s2444_s2 + $0xc0] sm:$0xff]  ;;  %v1700_v21 = vpack.c.bf16 %v389_v13, %v388_v12 }
  0x16   :  { %v372_v22 = vld [vmem:[%s2444_s2 + $0x130] sm:$0xff]  ;;  %v373_v23 = vld [vmem:[%s2444_s2 + $0x138] sm:$0xff]  ;;  %v359_v24 = vld [vmem:[%s2444_s2 + $0xc8] sm:$0xff]  ;;  %v1670_v28 = vpack.c.bf16 %v341_v17, %v340_v16 }
  0x17   :  { %v390_v26 = vld [vmem:[%s2444_s2 + $0x1c0] sm:$0xff]  ;;  %v391_v27 = vld [vmem:[%s2444_s2 + $0x1c8] sm:$0xff]  ;;  %v1702_v31 = vpack.c.bf16 %v373_v23, %v372_v22  ;;  %v1672_v33 = vpack.c.bf16 %v359_v24, %v358_v20  ;;  %v361_v38 = vld [vmem:[%s2444_s2 + $0xd8] sm:$0xff] }
  0x18   :  { %v342_v29 = vld [vmem:[%s2444_s2 + $0x40] sm:$0xff]  ;;  %v343_v30 = vld [vmem:[%s2444_s2 + $0x48] sm:$0xff]  ;;  %v1704_v35 = vpack.c.bf16 %v391_v27, %v390_v26  ;;  %v392_v39 = vld [vmem:[%s2444_s2 + $0x1d0] sm:$0xff] }
  0x19   :  { %v374_v36 = vld [vmem:[%s2444_s2 + $0x140] sm:$0xff]  ;;  %v375_v37 = vld [vmem:[%s2444_s2 + $0x148] sm:$0xff]  ;;  %v393_v40 = vld [vmem:[%s2444_s2 + $0x1d8] sm:$0xff]  ;;  %v1674_v41 = vpack.c.bf16 %v343_v30, %v342_v29 }
  0x1a   :  { %v344_v42 = vld [vmem:[%s2444_s2 + $0x50] sm:$0xff]  ;;  %v345_v43 = vld [vmem:[%s2444_s2 + $0x58] sm:$0xff]  ;;  %v1706_v44 = vpack.c.bf16 %v375_v37, %v374_v36  ;;  %v362_v46 = vld [vmem:[%s2444_s2 + $0xe0] sm:$0xff] }
  0x1b   :  { %v376_v48 = vld [vmem:[%s2444_s2 + $0x150] sm:$0xff]  ;;  %v363_v50 = vld [vmem:[%s2444_s2 + $0xe8] sm:$0xff]  ;;  %v394_v51 = vld [vmem:[%s2444_s2 + $0x1e0] sm:$0xff]  ;;  %v1678_v54 = vpack.c.bf16 %v345_v43, %v344_v42 }
  0x1c   :  { %v346_v55 = vld [vmem:[%s2444_s2 + $0x60] sm:$0xff]  ;;  %v347_v58 = vld [vmem:[%s2444_s2 + $0x68] sm:$0xff]  ;;  %v364_v63 = vld [vmem:[%s2444_s2 + $0xf0] sm:$0xff] }
  0x1d   :  { %v379_v62 = vld [vmem:[%s2444_s2 + $0x168] sm:$0xff]  ;;  %v1682_v1 = vpack.c.bf16 %v347_v58, %v346_v55  ;;  %v349_v6 = vld [vmem:[%s2444_s2 + $0x78] sm:$0xff]  ;;  %v396_v8 = vld [vmem:[%s2444_s2 + $0x1f0] sm:$0xff] }
  0x1e   :  { %v381_v12 = vld [vmem:[%s2444_s2 + $0x178] sm:$0xff]  ;;  %vm2253_vm2 = vmpackc.low %vm560_vm1, %vm560_vm1  ;;  %v318_v24 = vld [vmem:[%s2446_s4] sm:$0xff] }
  0x1f   :  { %v321_v22 = vld [vmem:[%s2446_s4 + $0x18] sm:$0xff]  ;;  %v320_v27 = vld [vmem:[%s2446_s4 + $0x10] sm:$0xff] }
  0x20   :  { %v324_v36 = vld [vmem:[%s2446_s4 + $0x30] sm:$0xff] }
  0xdf   :  { %v2076_v52 = vpop.f32.mrb[0].mxu0 }
  0xe0   :  { %v123_v57 = vpop.f32.mrb[1].mxu0  ;;  %1377 = vmatmul.mubr.msk.f32.vlgmr.msra.gmra.mrb[0].mxu1 %vm44_vm0, %v2076_v52  ;;  %1379 = vmatmul.mubr.msk.f32.vlgmr.msra.gmra.mrb[4].mxu0 %vm44_vm0, %v2076_v52 }
  0xe1   :  { %234 = vmatprep.mubr.f32.mxu1 %v1890_v34  ;;  %v2098_v60 = vpack.i.bf16 %v2076_v52, %v123_v57  ;;  %311 = vmatprep.mubr.f32.mxu0 %v1890_v34  ;;  %v360_v34 = vld [vmem:[%s2444_s2 + $0xd0] sm:$0xff]  ;;  %v1680_v57 = vpack.c.bf16 %v363_v50, %v362_v46 }
  0xe2   :  { %1659 = vmatpush3.bf16.msra.mxu1 %v1658_v47  ;;  %1691 = vmatpush3.bf16.msra.mxu0 %v1690_v49  ;;  %v1676_v45 = vpack.c.bf16 %v361_v38, %v360_v34  ;;  %v1708_v47 = vpack.c.bf16 %v393_v40, %v392_v39  ;;  %v377_v49 = vld [vmem:[%s2444_s2 + $0x158] sm:$0xff]  ;;  %v323_v39 = vld [vmem:[%s2446_s4 + $0x28] sm:$0xff] }
  0xe3   :  { %1803 = vrot.lane.b32.xlu0 %v2098_v60, %s1891_s17  ;;  %v2114_v4 = vpop.f32.mrb[2].mxu0  ;;  %1661 = vmatprep.subr.bf16.mxu1 %v1660_v53  ;;  %v395_v53 = vld [vmem:[%s2444_s2 + $0x1e8] sm:$0xff]  ;;  %v1710_v56 = vpack.c.bf16 %v377_v49, %v376_v48  ;;  %v325_v40 = vld [vmem:[%s2446_s4 + $0x38] sm:$0xff] }
  0xe4   :  { %1378 = vmatmul.mubr.msk.f32.gmra.mrb[2].mxu1 %vm44_vm0, %v2114_v4  ;;  %1380 = vmatmul.mubr.msk.f32.gmra.mrb[6].mxu0 %vm44_vm0, %v2114_v4  ;;  %v133_v9 = vpop.f32.mrb[3].mxu0  ;;  %v1712_v59 = vpack.c.bf16 %v395_v53, %v394_v51 }
  0xe5   :  { %v2139_v14 = vpack.i.bf16 %v2114_v4, %v133_v9  ;;  %1693 = vmatprep.subr.bf16.mxu0 %v1692_v61  ;;  %v378_v61 = vld [vmem:[%s2444_s2 + $0x160] sm:$0xff]  ;;  %v397_v9 = vld [vmem:[%s2444_s2 + $0x1f8] sm:$0xff] }
  0xe6   :  { %1663 = vmatpush3.bf16.msra.mxu1 %v1662_v0  ;;  %1695 = vmatpush3.bf16.msra.mxu0 %v1694_v3  ;;  %v365_v0 = vld [vmem:[%s2444_s2 + $0xf8] sm:$0xff]  ;;  %v1714_v2 = vpack.c.bf16 %v379_v62, %v378_v61  ;;  %v1716_v10 = vpack.c.bf16 %v397_v9, %v396_v8 }
  0xe7   :  { %1808 = vrot.lane.b32.xlu0 %v2139_v14, %s1891_s17  ;;  %1665 = vmatprep.subr.bf16.mxu1 %v1664_v5  ;;  %v1684_v3 = vpack.c.bf16 %v365_v0, %v364_v63  ;;  %v348_v5 = vld [vmem:[%s2444_s2 + $0x70] sm:$0xff] }
  0xe8   :  { %1697 = vmatprep.subr.bf16.mxu0 %v1696_v11  ;;  %v1686_v7 = vpack.c.bf16 %v349_v6, %v348_v5  ;;  %v380_v11 = vld [vmem:[%s2444_s2 + $0x170] sm:$0xff] }
  0xe9   :  { %v1718_v13 = vpack.c.bf16 %v381_v12, %v380_v11 }
  0xea   :  { %1667 = vmatpush3.bf16.msra.mxu1 %v1666_v15  ;;  %1699 = vmatpush3.bf16.msra.mxu0 %v1698_v18 }
  0xeb   :  { %1669 = vmatprep.subr.bf16.mxu1 %v1668_v19  ;;  %1701 = vmatprep.subr.bf16.mxu0 %v1700_v21  ;;  %v319_v21 = vld [vmem:[%s2446_s4 + $0x8] sm:$0xff] }
  0xee   :  { %1671 = vmatpush3.bf16.msra.mxu1 %v1670_v28  ;;  %1703 = vmatpush3.bf16.msra.mxu0 %v1702_v31 }
  0xef   :  { %1673 = vmatprep.subr.bf16.mxu1 %v1672_v33  ;;  %1705 = vmatprep.subr.bf16.mxu0 %v1704_v35  ;;  %v322_v35 = vld [vmem:[%s2446_s4 + $0x20] sm:$0xff] }
  0xf2   :  { %1675 = vmatpush3.bf16.msra.mxu1 %v1674_v41  ;;  %1707 = vmatpush3.bf16.msra.mxu0 %v1706_v44 }
  0xf3   :  { %1677 = vmatprep.subr.bf16.mxu1 %v1676_v45  ;;  %1709 = vmatprep.subr.bf16.mxu0 %v1708_v47 }
  0xf6   :  { %1679 = vmatpush3.bf16.msra.mxu1 %v1678_v54  ;;  %1711 = vmatpush3.bf16.msra.mxu0 %v1710_v56 }
  0xf7   :  { %1681 = vmatprep.subr.bf16.mxu1 %v1680_v57  ;;  %1713 = vmatprep.subr.bf16.mxu0 %v1712_v59 }
  0xfa   :  { %1683 = vmatpush3.bf16.msra.mxu1 %v1682_v1  ;;  %1715 = vmatpush3.bf16.msra.mxu0 %v1714_v2 }
  0xfb   :  { %1685 = vmatprep.subr.bf16.mxu1 %v1684_v3  ;;  %1717 = vmatprep.subr.bf16.mxu0 %v1716_v10  ;;  %v2301_v10 = vld [vmem:[%s2447_s5 + $0x8] sm:$0xff] }
  0xfe   :  { %1687 = vmatpush3.bf16.msra.mxu1 %v1686_v7  ;;  %1719 = vmatpush3.bf16.msra.mxu0 %v1718_v13  ;;  %v2296_v7 = vld [vmem:[%s2447_s5] sm:$0xff]  ;;  %s1892_s5 = smov 64  }
 0x155   :  { %v1804_v15 = vpop.permute.xlu0 %1803 }
 0x156   :  { %v1806_v16 = vunpack.i.h.bf16 %v1804_v15  ;;  %v1805_v17 = vunpack.i.l.bf16 %v1804_v15 }
 0x158   :  { %v1720_v19 = vpack.c.bf16 %v1806_v16, %v1805_v17 }
 0x159   :  { %v1809_v20 = vpop.permute.xlu0 %1808 }
 0x15a   :  { %1722 = vmatprep.subr.msk.bf16.mxu1 %vm2253_vm2, %v1720_v19  ;;  %v1811_v28 = vunpack.i.h.bf16 %v1809_v20  ;;  %v1810_v29 = vunpack.i.l.bf16 %v1809_v20 }
 0x15c   :  { %v1726_v43 = vpack.c.bf16 %v1811_v28, %v1810_v29 }
 0x1b3   :  { %v230_v23 = vpop.f32.mrb[0].mxu1  ;;  %v307_v26 = vpop.f32.mrb[4].mxu0 }
 0x1b4   :  { %v232_v30 = vpop.f32.mrb[1].mxu1  ;;  %v309_v31 = vpop.f32.mrb[5].mxu0  ;;  %v326_v37 = vmul.f32 %v318_v24, %v230_v23  ;;  %v328_v38 = vmul.f32 %v320_v27, %v307_v26 }
 0x1b5   :  { %v327_v33 = vmul.f32 %v319_v21, %v232_v30  ;;  %v329_v34 = vmul.f32 %v321_v22, %v309_v31 }
 0x1b7   :  { %v236_v41 = vpop.f32.mrb[2].mxu1  ;;  %462 = vmatprep.mubr.f32.mxu1 %v327_v33  ;;  %537 = vmatprep.mubr.f32.mxu0 %v329_v34  ;;  %v313_v42 = vpop.f32.mrb[6].mxu0 }
 0x1b8   :  { %v330_v44 = vmul.f32 %v322_v35, %v236_v41  ;;  %v238_v45 = vpop.f32.mrb[3].mxu1  ;;  %463 = vmatmul.mubr.f32.vlgmr.msra.gmra.mrb[4].mxu1 %v326_v37  ;;  %538 = vmatmul.mubr.f32.vlgmr.msra.gmra.mrb[8].mxu0 %v328_v38  ;;  %v332_v46 = vmul.f32 %v324_v36, %v313_v42  ;;  %v315_v47 = vpop.f32.mrb[7].mxu0 }
 0x1b9   :  { %v331_v48 = vmul.f32 %v323_v39, %v238_v45  ;;  %1725 = vmatpush3.bf16.xpose.msk.msra.mxu1 %vm2253_vm2, %v1720_v19  ;;  %v333_v49 = vmul.f32 %v325_v40, %v315_v47 }
 0x1ba   :  { %1728 = vmatprep.subr.msk.bf16.mxu1 %vm2253_vm2, %v1726_v43 }
 0x1bb   :  { %467 = vmatprep.mubr.f32.mxu1 %v331_v48  ;;  %542 = vmatprep.mubr.f32.mxu0 %v333_v49 }
 0x1bc   :  { %468 = vmatmul.mubr.f32.gmra.mrb[6].mxu1 %v330_v44  ;;  %543 = vmatmul.mubr.f32.gmra.mrb[10].mxu0 %v332_v46 }
 0x1bd   :  { %1555 = vmatprep.mubr.msk.f32.mxu1 %vm560_vm1, %v2076_v52 }
 0x1c1   :  { %1731 = vmatpush3.bf16.xpose.msk.msra.mxu1 %vm2253_vm2, %v1726_v43 }
 0x1c8   :  { %1556 = vmatmul.mubr.msk.f32.vlgmr.msra.gmra.mrb[8].mxu1 %vm560_vm1, %v2114_v4 }
 0x28b   :  { %v1443_v50 = vpop.f32.mrb[4].mxu1  ;;  %v1481_v51 = vpop.f32.mrb[8].mxu0 }
 0x28c   :  { %v1444_v53 = vpop.f32.mrb[5].mxu1  ;;  %v1482_v54 = vpop.f32.mrb[9].mxu0 }
 0x28d   :  { %v1445_v55 = vadd.f32 %v1444_v53, %v1443_v50  ;;  %v1483_v56 = vadd.f32 %v1482_v54, %v1481_v51 }
 0x28f   :  { %v1446_v57 = vpop.f32.mrb[6].mxu1  ;;  %v1484_v58 = vpop.f32.mrb[10].mxu0  ;;  %v540_v59 = vadd.f32 %v1483_v56, %v1445_v55 }
 0x290   :  { %v1447_v61 = vpop.f32.mrb[7].mxu1  ;;  %v1485_v62 = vpop.f32.mrb[11].mxu0 }
 0x291   :  { %v1448_v63 = vadd.f32 %v1447_v61, %v1446_v57  ;;  %v1486_v0 = vadd.f32 %v1485_v62, %v1484_v58 }
 0x293   :  { %v545_v1 = vadd.f32 %v1486_v0, %v1448_v63 }
 0x29b   :  { %v1557_v2 = vpop.f32.mrb[8].mxu1 }
 0x29c   :  { %v645_v3 = vadd.f32 %v1557_v2, %v545_v1  ;;  %v639_v5 = vpop.f32.mrb[9].mxu1 }
 0x29d   :  { %v640_v6 = vadd.f32 %v639_v5, %v540_v59 }
 0x29e   :  { %v649_v8 = vmul.f32 0.25, %v645_v3 }
 0x29f   :  { %v648_v9 = vmul.f32 0.25, %v640_v6 }
 0x2a0   :  { %v651_v13 = vadd.f32 %v649_v8, %v2301_v10 }
 0x2a1   :  { %v650_v11 = vadd.f32 %v648_v9, %v2296_v7 }
 0x2a2   :  { %v655_v15 = vsel %vm44_vm0, %v651_v13, -inf }
 0x2a3   :  { %v652_v12 = vsel %vm44_vm0, %v650_v11, -inf }
 0x2a4   :  { %653 = vmax.xlane.f32.xlu1 %v652_v12 }
 0x2a8   :  { %656 = vmax.xlane.f32.xlu1 %v655_v15 }
 0x331   :  { %v654_v16 = vpop.xlane.xlu1 %653 }
 0x332   :  { %v658_v17 = vsub.f32 %v650_v11, %v654_v16 }
 0x334   :  { %v660_v19 = vmul.f32 1.442695, %v658_v17 }
 0x335   :  { %v657_v20 = vpop.xlane.xlu1 %656 }
 0x336   :  { %1842 = vpow2.f32 %v660_v19  ;;  %v659_v21 = vsub.f32 %v651_v13, %v657_v20 }
 0x338   :  { %v662_v22 = vmul.f32 1.442695, %v659_v21 }
 0x33a   :  { %1844 = vpow2.f32 %v662_v22 }
 0x340   :  { %v1843_v23 = vpop.eup %1842 }
 0x341   :  { %v664_v24 = vsel %vm44_vm0, %v1843_v23, 0.0 }
 0x342   :  { %665 = vadd.xlane.f32.xlu0 %v664_v24 }
 0x344   :  { %v1845_v26 = vpop.eup %1844 }
 0x345   :  { %v667_v27 = vsel %vm44_vm0, %v1845_v26, 0.0 }
 0x346   :  { %668 = vadd.xlane.f32.xlu1 %v667_v27 }
 0x357   :  { %1813 = vrot.lane.b32.xlu1 %v2098_v60, %s1892_s5 }
 0x358   :  { %767 = vrot.lane.b32.xlu0 %v2076_v52, %s1893_s29 }
 0x35b   :  { %1818 = vrot.lane.b32.xlu1 %v2139_v14, %s1892_s5 }
 0x35f   :  { %1823 = vrot.lane.b32.xlu1 %v2098_v60, %s1894_s30 }
 0x363   :  { %1828 = vrot.lane.b32.xlu1 %v2139_v14, %s1894_s30 }
 0x367   :  { %769 = vrot.lane.b32.xlu1 %v2114_v4, %s1893_s29 }
 0x36b   :  { %781 = vrot.lane.b32.xlu1 %v540_v59, %s1891_s17 }
 0x36f   :  { %783 = vrot.lane.b32.xlu1 %v545_v1, %s1891_s17  ;;  %s1895_s17 = smov 48  }
 0x3cf   :  { %v666_v28 = vpop.xlane.xlu0 %665 }
 0x3d0   :  { %1846 = vrcp.f32 %v666_v28  ;;  %v1003_v28 = vld [vmem:[%s2448_s6] sm:$0xff] }
 0x3d3   :  { %v669_v29 = vpop.xlane.xlu1 %668  ;;  %v768_v46 = vpop.permute.xlu0 %767 }
 0x3d4   :  { %1848 = vrcp.f32 %v669_v29  ;;  %v1004_v29 = vld [vmem:[%s2448_s6 + $0x8] sm:$0xff] }
 0x3d7   :  { %v1814_v30 = vpop.permute.xlu1 %1813 }
 0x3d8   :  { %v1816_v31 = vunpack.i.h.bf16 %v1814_v30  ;;  %v1815_v52 = vunpack.i.l.bf16 %v1814_v30  ;;  %v1760_v30 = vpack.c.bf16 %v1004_v29, %v1003_v28  ;;  %v1227_v28 = vld [vmem:[%s2450_s8 + $0x30] sm:$0xff]  ;;  %v1228_v29 = vld [vmem:[%s2450_s8 + $0x38] sm:$0xff] }
 0x3da   :  { %v1847_v33 = vpop.eup %1846  ;;  %v1732_v34 = vpack.c.bf16 %v1816_v31, %v1815_v52  ;;  %v1005_v31 = vld [vmem:[%s2448_s6 + $0x10] sm:$0xff]  ;;  %v1006_v52 = vld [vmem:[%s2448_s6 + $0x18] sm:$0xff] }
 0x3db   :  { %v1819_v35 = vpop.permute.xlu1 %1818  ;;  %v672_v36 = vmul.f32 %v1847_v33, %v1843_v23  ;;  %v1764_v33 = vpack.c.bf16 %v1006_v52, %v1005_v31 }
 0x3dc   :  { %v1821_v37 = vunpack.i.h.bf16 %v1819_v35  ;;  %v1820_v38 = vunpack.i.l.bf16 %v1819_v35  ;;  %1733 = vmatprep.subr.bf16.mxu0 %v1732_v34 }
 0x3dd   :  { %1735 = vmatpush3.bf16.msra.mxu0 %v1732_v34  ;;  %1566 = vmatprep.mubr.msk.f32.mxu0 %vm44_vm0, %v672_v36 }
 0x3de   :  { %v1736_v4 = vpack.c.bf16 %v1821_v37, %v1820_v38  ;;  %v1849_v39 = vpop.eup %1848 }
 0x3df   :  { %v1824_v40 = vpop.permute.xlu1 %1823  ;;  %v673_v43 = vmul.f32 %v1849_v39, %v1845_v26 }
 0x3e0   :  { %v1826_v41 = vunpack.i.h.bf16 %v1824_v40  ;;  %v1825_v42 = vunpack.i.l.bf16 %v1824_v40  ;;  %1737 = vmatprep.subr.bf16.mxu0 %v1736_v4 }
 0x3e1   :  { %1739 = vmatpush3.bf16.msra.mxu0 %v1736_v4 }
 0x3e2   :  { %v1740_v44 = vpack.c.bf16 %v1826_v41, %v1825_v42 }
 0x3e3   :  { %v1829_v45 = vpop.permute.xlu1 %1828 }
 0x3e4   :  { %1567 = vmatmul.mubr.msk.f32.vlgmr.msra.gmra.mrb[12].mxu0 %vm44_vm0, %v673_v43  ;;  %1742 = vmatprep.subr.msk.bf16.mxu0 %vm2253_vm2, %v1740_v44  ;;  %v1831_v47 = vunpack.i.h.bf16 %v1829_v45  ;;  %v1830_v48 = vunpack.i.l.bf16 %v1829_v45 }
 0x3e5   :  { %1577 = vmatprep.mubr.msk.f32.mxu0 %vm560_vm1, %v768_v46 }
 0x3e6   :  { %v1746_v49 = vpack.c.bf16 %v1831_v47, %v1830_v48 }
 0x3e7   :  { %v770_v50 = vpop.permute.xlu1 %769 }
 0x3ea   :  { %1745 = vmatpush3.bf16.xpose.msk.msra.mxu0 %vm2253_vm2, %v1740_v44 }
 0x3eb   :  { %1748 = vmatprep.subr.msk.bf16.mxu0 %vm2253_vm2, %v1746_v49  ;;  %v782_v54 = vpop.permute.xlu1 %781 }
 0x3ef   :  { %v784_v55 = vpop.permute.xlu1 %783 }
 0x3f2   :  { %1751 = vmatpush3.bf16.xpose.msk.msra.mxu0 %vm2253_vm2, %v1746_v49 }
 0x3f9   :  { %1578 = vmatmul.mubr.msk.f32.vlgmr.msra.gmra.mrb[14].mxu0 %vm560_vm1, %v770_v50 }
 0x4b7   :  { %v2329_v51 = vpop.f32.mrb[12].mxu0 }
 0x4b8   :  { %v2331_v53 = vpop.f32.mrb[13].mxu0 }
 0x4cc   :  { %v1579_v56 = vpop.f32.mrb[14].mxu0 }
 0x4cd   :  { %v871_v57 = vadd.f32 %v1579_v56, %v784_v55  ;;  %v865_v58 = vpop.f32.mrb[15].mxu0  ;;  %v1131_v55 = vld [vmem:[%s2449_s7 + $0x8] sm:$0xff] }
 0x4ce   :  { %v866_v59 = vadd.f32 %v865_v58, %v782_v54  ;;  %v1133_v58 = vld [vmem:[%s2449_s7 + $0x18] sm:$0xff] }
 0x4cf   :  { %v875_v61 = vmul.f32 0.25, %v871_v57  ;;  %v1132_v57 = vld [vmem:[%s2449_s7 + $0x10] sm:$0xff] }
 0x4d0   :  { %v874_v62 = vmul.f32 0.25, %v866_v59  ;;  %v1772_v59 = vpack.c.bf16 %v1133_v58, %v1132_v57 }
 0x4d1   :  { %v877_v63 = vadd.f32 %v875_v61, %v2301_v10  ;;  %v1221_v61 = vld [vmem:[%s2450_s8] sm:$0xff] }
 0x4d2   :  { %v876_v18 = vadd.f32 %v874_v62, %v2296_v7  ;;  %v1222_v62 = vld [vmem:[%s2450_s8 + $0x8] sm:$0xff] }
 0x4d3   :  { %v881_v0 = vsel %vm44_vm0, %v877_v63, -inf }
 0x4d4   :  { %882 = vmax.xlane.f32.xlu0 %v881_v0  ;;  %v878_v1 = vsel %vm44_vm0, %v876_v18, -inf  ;;  %v1224_v0 = vld [vmem:[%s2450_s8 + $0x18] sm:$0xff] }
 0x4d5   :  { %879 = vmax.xlane.f32.xlu1 %v878_v1 }
 0x561   :  { %v883_v2 = vpop.xlane.xlu0 %882 }
 0x562   :  { %v885_v3 = vsub.f32 %v877_v63, %v883_v2  ;;  %v880_v5 = vpop.xlane.xlu1 %879  ;;  %v1223_v63 = vld [vmem:[%s2450_s8 + $0x10] sm:$0xff]  ;;  %v1225_v2 = vld [vmem:[%s2450_s8 + $0x20] sm:$0xff] }
 0x563   :  { %v884_v6 = vsub.f32 %v876_v18, %v880_v5  ;;  %v1776_v18 = vpack.c.bf16 %v1222_v62, %v1221_v61  ;;  %v1780_v1 = vpack.c.bf16 %v1224_v0, %v1223_v63 }
 0x564   :  { %v888_v8 = vmul.f32 1.442695, %v885_v3  ;;  %v1226_v3 = vld [vmem:[%s2450_s8 + $0x28] sm:$0xff]  ;;  %s1897_s8 = smov [#allocation2]  }
 0x565   :  { %v886_v9 = vmul.f32 1.442695, %v884_v6  ;;  %v1784_v5 = vpack.c.bf16 %v1226_v3, %v1225_v2  ;;  %s1362_s16 = sshll.u32 %s1897_s8, 4  ;;  %s1363_s16 = int_to_ptr.vmem [resolvable:$true] %s1362_s16 }
 0x566   :  { %1850 = vpow2.f32 %v888_v8  ;;  %s1866_s18 = scalar_lea.vmem %s1363_s16, 256  ;;  %p1871_p1 = scmp.lt.s32.totalorder %s1363_s16, %s1363_s16 }
 0x567   :  { %1852 = vpow2.f32 %v886_v9  ;;  %v1118_v9 = vlaneseq  ;;  %p1867_p0 = scmp.ne.s32.totalorder %s1363_s16, %s1866_s18  ;;  %p1872_p2 = scmp.lt.s32.totalorder %s1866_s18, %s1866_s18 }
 0x569   :  { %p1873_p3 = por %p1872_p2, %p1871_p1 }
 0x56b   :  { %p1874_p4 = pnand %p1873_p3, %p1867_p0 }
 0x570   :  { %v1851_v11 = vpop.eup %1850 }
 0x571   :  { %v1853_v12 = vpop.eup %1852  ;;  %v893_v10 = vsel %vm44_vm0, %v1851_v11, 0.0 }
 0x572   :  { %894 = vadd.xlane.f32.xlu0 %v893_v10  ;;  %v890_v7 = vsel %vm44_vm0, %v1853_v12, 0.0 }
 0x573   :  { %891 = vadd.xlane.f32.xlu1 %v890_v7  ;;  %v2397_v7 = vshrl.u32 %v1118_v9, 7 }
 0x575   :  { %v1136_v31 = vsub.s32 5, %v2397_v7  ;;  %v1351_v0 = vsub.s32 4, %v2397_v7 }
 0x584   :  { %1833 = vrot.lane.b32.xlu1 %v2098_v60, %s1895_s17 }
 0x588   :  { %1838 = vrot.lane.b32.xlu0 %v2139_v14, %s1895_s17 }
 0x5ff   :  { %v895_v13 = vpop.xlane.xlu0 %894 }
 0x600   :  { %v892_v15 = vpop.xlane.xlu1 %891 }
 0x601   :  { %1854 = vrcp.f32 %v892_v15  ;;  %v1120_v15 = vsub.s32 0, %v2397_v7 }
 0x602   :  { %1856 = vrcp.f32 %v895_v13 }
 0x603   :  { %v1839_v16 = vpop.permute.xlu0 %1838 }
 0x604   :  { %v1834_v17 = vpop.permute.xlu1 %1833  ;;  %v1841_v19 = vunpack.i.h.bf16 %v1839_v16  ;;  %v1840_v20 = vunpack.i.l.bf16 %v1839_v16  ;;  %v2403_v16 = vld [vmem:[%s2451_s9] sm:$0x3f] }
 0x605   :  { %v1836_v21 = vunpack.i.h.bf16 %v1834_v17  ;;  %v1835_v22 = vunpack.i.l.bf16 %v1834_v17  ;;  %v1126_v17 = vsub.s32 1, %v2397_v7  ;;  %v1137_v52 = vrot.slane %v2403_v16, %v1136_v31 }
 0x606   :  { %v1756_v24 = vpack.c.bf16 %v1841_v19, %v1840_v20  ;;  %v1121_v19 = vrot.slane %v2403_v16, %v1120_v15 }
 0x607   :  { %v1752_v23 = vpack.c.bf16 %v1836_v21, %v1835_v22  ;;  %v1127_v22 = vrot.slane %v2403_v16, %v1126_v17 }
 0x609   :  { %1753 = vmatprep.subr.bf16.mxu1 %v1752_v23 }
 0x60a   :  { %1755 = vmatpush3.bf16.msra.mxu1 %v1752_v23 }
 0x60b   :  { %v1855_v26 = vpop.eup %1854  ;;  %1757 = vmatprep.subr.bf16.mxu1 %v1756_v24 }
 0x60c   :  { %v1857_v27 = vpop.eup %1856  ;;  %v898_v60 = vmul.f32 %v1855_v26, %v1853_v12 }
 0x60d   :  { %v899_v14 = vmul.f32 %v1857_v27, %v1851_v11 }
 0x60e   :  { %1759 = vmatpush3.bf16.msra.mxu1 %v1756_v24  ;;  %1588 = vmatprep.mubr.msk.f32.mxu1 %vm44_vm0, %v898_v60 }
 0x60f   :  { %1761 = vmatprep.subr.bf16.mxu1 %v1760_v30 }
 0x611   :  { %1589 = vmatmul.mubr.msk.f32.vlgmr.msra.gmra.mrb[10].mxu1 %vm44_vm0, %v899_v14 }
 0x612   :  { %1763 = vmatpush3.bf16.msra.mxu1 %v1760_v30  ;;  %v1788_v30 = vpack.c.bf16 %v1228_v29, %v1227_v28 }
 0x613   :  { %1765 = vmatprep.subr.bf16.mxu1 %v1764_v33 }
 0x616   :  { %1767 = vmatpush3.bf16.msra.mxu1 %v1764_v33 }
 0x617   :  { %1777 = vmatprep.subr.bf16.mxu1 %v1776_v18 }
 0x6e4   :  { %v1590_v34 = vpop.f32.mrb[10].mxu1 }
 0x6e5   :  { %v984_v35 = vpop.f32.mrb[11].mxu1 }
 0x6e6   :  { %995 = vrot.lane.b32.xlu1 %v984_v35, %s1896_s3 }
 0x6ea   :  { %997 = vrot.lane.b32.xlu1 %v1590_v34, %s1896_s3 }
 0x758   :  { %v996_v36 = vpop.permute.xlu1 %995 }
 0x759   :  { %v1001_v37 = vsel %vm560_vm1, %v2331_v53, %v996_v36 }
 0x75a   :  { %1599 = vmatprep.mubr.msk.f32.mxu1 %vm44_vm0, %v1001_v37 }
 0x75c   :  { %v998_v38 = vpop.permute.xlu1 %997 }
 0x75d   :  { %v1002_v4 = vsel %vm560_vm1, %v2329_v51, %v998_v38 }
 0x75e   :  { %1600 = vmatmul.mubr.msk.f32.vlgmr.msra.gmra.mrb[12].mxu1 %vm44_vm0, %v1002_v4  ;;  %v1231_v4 = vsub.s32 2, %v2397_v7 }
 0x75f   :  { %1779 = vmatpush3.bf16.msra.mxu1 %v1776_v18  ;;  %v1345_v18 = vsub.s32 3, %v2397_v7 }
 0x760   :  { %1781 = vmatprep.subr.bf16.mxu1 %v1780_v1 }
 0x763   :  { %1783 = vmatpush3.bf16.msra.mxu1 %v1780_v1  ;;  %v1346_v1 = vrot.slane %v2403_v16, %v1345_v18 }
 0x764   :  { %1785 = vmatprep.subr.bf16.mxu1 %v1784_v5 }
 0x767   :  { %1787 = vmatpush3.bf16.msra.mxu1 %v1784_v5 }
 0x768   :  { %1789 = vmatprep.subr.bf16.mxu1 %v1788_v30 }
 0x76b   :  { %1791 = vmatpush3.bf16.msra.mxu1 %v1788_v30 }
 0x831   :  { %v1601_v39 = vpop.f32.mrb[12].mxu1 }
 0x832   :  { %v1090_v40 = vadd.f32 %v1601_v39, %v2033_v32  ;;  %v1079_v41 = vpop.f32.mrb[13].mxu1  ;;  %v1232_v39 = vrot.slane %v2403_v16, %v1231_v4 }
 0x833   :  { %v1089_v42 = vadd.f32 %v1079_v41, %v2016_v25  ;;  %v1130_v25 = vld [vmem:[%s2449_s7] sm:$0xff] }
 0x834   :  { %v1094_v43 = vsel %vm44_vm0, %v1090_v40, 0.0  ;;  %v1768_v56 = vpack.c.bf16 %v1131_v55, %v1130_v25 }
 0x835   :  { %1095 = vadd.xlane.f32.xlu1 %v1094_v43  ;;  %v1091_v44 = vsel %vm44_vm0, %v1089_v42, 0.0 }
 0x836   :  { %1092 = vadd.xlane.f32.xlu0 %v1091_v44  ;;  %1769 = vmatprep.subr.bf16.mxu0 %v1768_v56 }
 0x837   :  { %1771 = vmatpush3.bf16.msra.mxu0 %v1768_v56 }
 0x838   :  { %1773 = vmatprep.subr.bf16.mxu0 %v1772_v59 }
 0x83b   :  { %1775 = vmatpush3.bf16.msra.mxu0 %v1772_v59 }
 0x8c2   :  { %v1096_v45 = vpop.xlane.xlu1 %1095 }
 0x8c3   :  { %v1099_v46 = vmul.f32 0.03125, %v1096_v45  ;;  %v1093_v47 = vpop.xlane.xlu0 %1092 }
 0x8c4   :  { %v1098_v48 = vmul.f32 0.03125, %v1093_v47 }
 0x8c5   :  { %v1101_v49 = vsub.f32 %v1090_v40, %v1099_v46 }
 0x8c6   :  { %v1100_v50 = vsub.f32 %v1089_v42, %v1098_v48 }
 0x8c7   :  { %v1103_v54 = vmul.f32 %v1101_v49, %v1101_v49 }
 0x8c8   :  { %v1102_v51 = vmul.f32 %v1100_v50, %v1100_v50 }
 0x8c9   :  { %v1107_v32 = vsel %vm44_vm0, %v1103_v54, 0.0 }
 0x8ca   :  { %v1104_v53 = vsel %vm44_vm0, %v1102_v51, 0.0 }
 0x8cb   :  { %1105 = vadd.xlane.f32.xlu0 %v1104_v53 }
 0x8cf   :  { %1108 = vadd.xlane.f32.xlu0 %v1107_v32 }
 0x958   :  { %v1106_v6 = vpop.xlane.xlu0 %1105 }
 0x959   :  { %v1110_v8 = vmul.f32 0.03125, %v1106_v6  ;;  %v1352_v6 = vrot.slane %v2403_v16, %v1351_v0 }
 0x95b   :  { %v1112_v11 = vadd.f32 1e-05, %v1110_v8 }
 0x95c   :  { %v1109_v12 = vpop.xlane.xlu0 %1108 }
 0x95d   :  { %1858 = vrsqrt.f32 %v1112_v11  ;;  %v1111_v10 = vmul.f32 0.03125, %v1109_v12 }
 0x95f   :  { %v1113_v13 = vadd.f32 1e-05, %v1111_v10 }
 0x961   :  { %1860 = vrsqrt.f32 %v1113_v13 }
 0x967   :  { %v1859_v20 = vpop.eup %1858 }
 0x968   :  { %v1116_v21 = vmul.f32 %v1859_v20, %v1100_v50 }
 0x96a   :  { %v1122_v23 = vmul.f32 %v1121_v19, %v1116_v21 }
 0x96b   :  { %v1861_v24 = vpop.eup %1860 }
 0x96c   :  { %v1117_v26 = vmul.f32 %v1861_v24, %v1101_v49  ;;  %v1128_v27 = vadd.f32 %v1127_v22, %v1122_v23 }
 0x96e   :  { %v1123_v60 = vmul.f32 %v1121_v19, %v1117_v26  ;;  %1610 = vmatprep.mubr.msk.f32.mxu0 %vm44_vm0, %v1128_v27 }
 0x970   :  { %v1129_v14 = vadd.f32 %v1127_v22, %v1123_v60 }
 0x972   :  { %1611 = vmatmul.mubr.msk.f32.vlgmr.msra.gmra.mrb[16].mxu0 %vm44_vm0, %v1129_v14 }
 0xa45   :  { %v1612_v33 = vpop.f32.mrb[16].mxu0 }
 0xa46   :  { %v1216_v34 = vadd.f32 %v1612_v33, %v1137_v52  ;;  %v1210_v35 = vpop.f32.mrb[17].mxu0 }
 0xa47   :  { %v1211_v36 = vadd.f32 %v1210_v35, %v1137_v52 }
 0xa48   :  { %v1220_v38 = vmax.f32 %v1216_v34, 0.0 }
 0xa49   :  { %v1219_v37 = vmax.f32 %v1211_v36, 0.0 }
 0xa4b   :  { %1629 = vmatprep.mubr.msk.f32.mxu1 %vm1233_vm3, %v1219_v37 }
 0xa4c   :  { %1630 = vmatmul.mubr.msk.f32.vlgmr.msra.gmra.mrb[14].mxu1 %vm1233_vm3, %v1220_v38 }
 0xb1f   :  { %v1631_v40 = vpop.f32.mrb[14].mxu1 }
 0xb20   :  { %v1312_v41 = vadd.f32 %v1631_v40, %v1232_v39  ;;  %v1306_v42 = vpop.f32.mrb[15].mxu1 }
 0xb21   :  { %v1307_v43 = vadd.f32 %v1306_v42, %v1232_v39 }
 0xb22   :  { %v1316_v44 = vadd.f32 %v1312_v41, %v1129_v14 }
 0xb23   :  { %v1315_v45 = vadd.f32 %v1307_v43, %v1128_v27 }
 0xb24   :  { %v1320_v46 = vsel %vm44_vm0, %v1316_v44, 0.0 }
 0xb25   :  { %1321 = vadd.xlane.f32.xlu0 %v1320_v46  ;;  %v1317_v47 = vsel %vm44_vm0, %v1315_v45, 0.0 }
 0xb26   :  { %1318 = vadd.xlane.f32.xlu1 %v1317_v47 }
 0xbb2   :  { %v1322_v48 = vpop.xlane.xlu0 %1321 }
 0xbb3   :  { %v1324_v49 = vmul.f32 0.03125, %v1322_v48  ;;  %v1319_v50 = vpop.xlane.xlu1 %1318 }
 0xbb4   :  { %v1323_v51 = vmul.f32 0.03125, %v1319_v50 }
 0xbb5   :  { %v1326_v53 = vsub.f32 %v1316_v44, %v1324_v49 }
 0xbb6   :  { %v1325_v54 = vsub.f32 %v1315_v45, %v1323_v51 }
 0xbb7   :  { %v1328_v32 = vmul.f32 %v1326_v53, %v1326_v53 }
 0xbb8   :  { %v1327_v25 = vmul.f32 %v1325_v54, %v1325_v54 }
 0xbb9   :  { %v1332_v55 = vsel %vm44_vm0, %v1328_v32, 0.0 }
 0xbba   :  { %1333 = vadd.xlane.f32.xlu0 %v1332_v55  ;;  %v1329_v56 = vsel %vm44_vm0, %v1327_v25, 0.0 }
 0xbbb   :  { %1330 = vadd.xlane.f32.xlu1 %v1329_v56 }
 0xc47   :  { %v1334_v57 = vpop.xlane.xlu0 %1333 }
 0xc48   :  { %v1336_v58 = vmul.f32 0.03125, %v1334_v57  ;;  %v1331_v59 = vpop.xlane.xlu1 %1330 }
 0xc49   :  { %v1335_v61 = vmul.f32 0.03125, %v1331_v59 }
 0xc4a   :  { %v1338_v62 = vadd.f32 1e-05, %v1336_v58 }
 0xc4b   :  { %v1337_v63 = vadd.f32 1e-05, %v1335_v61 }
 0xc4c   :  { %1862 = vrsqrt.f32 %v1338_v62 }
 0xc4d   :  { %1864 = vrsqrt.f32 %v1337_v63 }
 0xc56   :  { %v1863_v2 = vpop.eup %1862 }
 0xc57   :  { %v1865_v3 = vpop.eup %1864  ;;  %v1342_v5 = vmul.f32 %v1863_v2, %v1326_v53 }
 0xc58   :  { %v1341_v8 = vmul.f32 %v1865_v3, %v1325_v54 }
 0xc59   :  { %v1348_v9 = vmul.f32 %v1346_v1, %v1342_v5 }
 0xc5a   :  { %v1347_v11 = vmul.f32 %v1346_v1, %v1341_v8 }
 0xc5b   :  { %v1354_v12 = vadd.f32 %v1352_v6, %v1348_v9 }
 0xc5c   :  { %v1353_v10 = vadd.f32 %v1352_v6, %v1347_v11 }
 0xc5d   :  { %1356 = vst.msk [vmem:[#allocation2 + $0x8] sm:$0xff] %vm44_vm0, %v1354_v12 }
 0xc5e   :  { %1355 = vst.msk [vmem:[#allocation2] sm:$0xff] %vm44_vm0, %v1353_v10 }
 0xc5f   :  { %1877 = shalt.err (!%p1874_p4)
}
 0xc60   :  { %s1878_s19 = scalar_lea.hbm %s2452_s10, 256 }
 0xc61   :  { %p1879_p5 = scmp.ne.s32.totalorder %s2452_s10, %s1878_s19  ;;  %p1882_p6 = scmp.lt.u32.totalorder %s1878_s19, %s2452_s10 }
 0xc63   :  { %p1884_p7 = pnand %p1882_p6, %p1879_p5 }
 0xc65   :  { %1887 = shalt.err (!%p1884_p7)
}
 0xc66   :  { %s1898_s23 = smov 128   ;;  %s1899_s24 = smov 8  }
 0xc67   :  { %1368 = dma.vmem_to_hbm [thread:$0]  %s1363_s16, 256, %s2452_s10, [#allocation3], %s1898_s23, %s1898_s23, %s1899_s24  }
 0xc68   :  { %1888 = dma.done.wait [#allocation3], 256  }
 0xc69   :  { %1889 = vsyncadd [#allocation3], 4294967040 }
 0xc6a   :  { %1372 = vsyncpa [#allocation3], 1 }

</bundles_post_ra>
